<compile_context>
chip_gen: v7x
topology: tpu7x:2x2x1
jax: 0.10.0
libtpu: 0.0.40
codegen_flags: <defaults>
</compile_context>

<pallas_src>
import math

import jax
import jax.numpy as jnp
from jax import lax
from jax.experimental import pallas as pl
from jax.experimental.pallas import tpu as pltpu


def make_pe(d_model=48, seq_len=24, repeat=15):
    """Deterministic sinusoidal table, identical to PositionalEmbedding.__init__."""
    position = jnp.arange(seq_len, dtype=jnp.float32)[:, None]
    div_term = jnp.exp(
        jnp.arange(0, d_model, 2, dtype=jnp.float32) * -(math.log(10000.0) / d_model)
    )
    pe = jnp.zeros((seq_len, d_model), jnp.float32)
    pe = pe.at[:, 0::2].set(jnp.sin(position * div_term))
    pe = pe.at[:, 1::2].set(jnp.cos(position * div_term))
    return jnp.tile(pe, (repeat, 1))  # (repeat * seq_len, d_model)


def prepare_params(pe, weights, biases, batch_size, seq_len, ts_len):
    """ONE-TIME parameter preparation (not part of the per-step forward).

    * Folds the PE-mean projection of layer 0 into a precomputed matrix
      A = W0[:, seq_len:] @ pe.T / Lt  (out0, total_len).
    * Block-diagonalises each layer weight over the batch and pre-tiles the
      biases, so the kernel forward is one batched MXU call per layer with x
      kept in torch-native layout.

    weights[l]: f32[out_l, in_l] (torch nn.Linear layout); biases[l]: f32[out_l].
    NOTE: chaining num_layers > 1 assumes out_l == in_{l+1} (same as torch).
    """
    B = batch_size
    hi = lax.Precision.HIGHEST
    w0, b0 = weights[0], biases[0]
    eye = jnp.eye(B, dtype=w0.dtype)

    # x-part of layer 0, block-diagonal over batch: (B*out0, B*seq_len)
    w0_bd = jnp.kron(eye, w0[:, :seq_len])
    # PE-mean folded through the temp-part of layer 0.
    a_proj = jnp.dot(w0[:, seq_len:], pe.T, precision=hi) / float(ts_len)

    layer_params = [w0_bd, jnp.tile(b0, B).reshape(-1, 1)]
    for w, bvec in zip(weights[1:], biases[1:]):
        layer_params.append(jnp.kron(jnp.eye(B, dtype=w.dtype), w))
        layer_params.append(jnp.tile(bvec, B).reshape(-1, 1))
    return a_proj, layer_params


def _make_model_kernel(ts_len):
    """Fused grid-less kernel: window mask + folded PE term + batched linear stack."""

    def kernel(ts_ref, x_ref, a_ref, *rest):
        # ts_ref : VMEM f32[1, B]              raw time_stamp[:,0,0] values
        # x_ref  : VMEM f32[B, S, C]           x in torch-native layout
        # a_ref  : VMEM f32[out0, total_len]   PE-mean folded through layer-0 weight
        # rest   : (w0_bd, b0, w1_bd, b1, ..., out_ref)
        #          w_bd: (B*out, B*in) block-diag, b: (B*out, 1)
        out_ref = rest[-1]
        layer_refs = rest[:-1]
        num_layers = len(layer_refs) // 2

        B, S, C = x_ref.shape
        total_len = a_ref.shape[1]

        # --- per-batch PE window -> 0/1 selection mask (VPU only) ---------
        # torch: offset = int(time_stamp[b,0,0]); clamp keeps the window in
        # bounds (deviation from torch only for invalid offsets).
        lo = jnp.clip(jnp.floor(ts_ref[...]), 0.0, float(total_len - ts_len))
        lo = lo.astype(jnp.int32)                                   # (1, B)
        row = lax.broadcasted_iota(jnp.int32, (total_len, B), 0)    # row ids
        sel = jnp.logical_and(row >= lo, row < lo + ts_len).astype(jnp.float32)

        # PE-mean term, already projected through layer 0: (out0, B) on MXU.
        contrib = jnp.dot(a_ref[...], sel, preferred_element_type=jnp.float32)
        # Reorient to the (B*out0, 1) column of the batched output slab.
        temp_col = jnp.concatenate(
            [contrib[:, b:b + 1] for b in range(B)], axis=0)        # (B*out0, 1)

        # --- layer 0: ONE batched MXU call, x kept in native layout -------
        # (B, S, C) -> (B*S, C) is a free reshape (S is a multiple of 8).
        x2 = x_ref[...].reshape(B * S, C)
        h = jnp.dot(layer_refs[0][...], x2, preferred_element_type=jnp.float32)
        h = h + temp_col + layer_refs[1][...]                       # (B*out0, C)

        # --- remaining layers (block-diagonal over batch, pre-tiled bias) -
        for l in range(1, num_layers):
            h = jnp.dot(layer_refs[2 * l][...], h,
                        preferred_element_type=jnp.float32)
            h = h + layer_refs[2 * l + 1][...]

        # --- single dense store, torch-native (B, pred_len, enc_in) -------
        out_ref[...] = h.reshape(B, h.shape[0] // B, C).astype(out_ref.dtype)

    return kernel


def model_forward(x, time_stamp, a_proj, layer_params):
    """x: f32[B, seq_len, enc_in]; time_stamp: f32[B, Lt, 1].

    a_proj / layer_params come from prepare_params (one-time prep).
    Returns f32[B, pred_len, enc_in] (same as Model.forward, individual=False).
    """
    B, S, C = x.shape
    Lt = time_stamp.shape[1]
    out_last = layer_params[-1].shape[0] // B

    # Only per-call prep op: the (B,) per-batch stamps, kept as raw f32;
    # int-cast and clamping happen inside the kernel.
    ts_row = time_stamp[:, 0, 0].reshape(1, B)

    kernel = _make_model_kernel(Lt)
    n_in = 3 + len(layer_params)
    return pl.pallas_call(
        kernel,
        out_shape=jax.ShapeDtypeStruct((B, out_last, C), jnp.float32),
        in_specs=[pl.BlockSpec(memory_space=pltpu.MemorySpace.VMEM)] * n_in,
        out_specs=pl.BlockSpec(memory_space=pltpu.MemorySpace.VMEM),
    )(ts_row, x, a_proj, *layer_params)


def reference_forward(x, time_stamp, pe, weights, biases):
    """Pure-JAX mirror of the PyTorch Model.forward (individual=False)."""
    B, seq_len, enc_in = x.shape
    total_len, d_model = pe.shape
    Lt = time_stamp.shape[1]
    offs = jnp.clip(time_stamp[:, 0, 0].astype(jnp.int32), 0, total_len - Lt)
    enc = jnp.stack(
        [lax.dynamic_slice(pe, (offs[i], 0), (Lt, d_model)) for i in range(B)]
    )                                                     # (B, Lt, d_model)
    temp = enc.mean(axis=1)                               # (B, d_model)
    temp = jnp.broadcast_to(temp[:, :, None], (B, d_model, enc_in))
    inp = jnp.concatenate([x, temp], axis=1)              # (B, seq_len+d_model, enc_in)
    h = jnp.transpose(inp, (0, 2, 1))                     # (B, enc_in, in_ch)
    hi = lax.Precision.HIGHEST
    for w, bvec in zip(weights, biases):
        h = jnp.matmul(h, w.T, precision=hi) + bvec
    return jnp.transpose(h, (0, 2, 1))                    # (B, pred_len, enc_in)


if __name__ == "__main__":
    # Small shapes consistent with the module:
    #   args.seq_len=16, args.pred_len=8, args.enc_in=4, num_lin_layers=1,
    #   individual=False; PositionalEmbedding(d_model=48, seq_len=24) tiled 15x.
    d_model, pe_seq_len, repeat = 48, 24, 15
    B, seq_len, pred_len, enc_in, num_lin_layers = 2, 16, 8, 4, 1
    Lt = seq_len                                          # time_stamp length
    in_channels = seq_len + d_model                       # 64

    pe = make_pe(d_model, pe_seq_len, repeat)
    total_len = pe.shape[0]

    key = jax.random.PRNGKey(0)
    keys = jax.random.split(key, 3 + 2 * num_lin_layers)
    kx, koff, kts = keys[0], keys[1], keys[2]
    kw = keys[3:]

    x = jax.random.normal(kx, (B, seq_len, enc_in), jnp.float32)
    offsets = jax.random.randint(koff, (B,), 0, total_len - Lt)
    time_stamp = jax.random.normal(kts, (B, Lt, 1), jnp.float32)
    time_stamp = time_stamp.at[:, 0, 0].set(offsets.astype(jnp.float32))

    weights, biases = [], []
    fan_in = in_channels
    for l in range(num_lin_layers):
        weights.append(0.05 * jax.random.normal(kw[2 * l], (pred_len, fan_in), jnp.float32))
        biases.append(0.05 * jax.random.normal(kw[2 * l + 1], (pred_len,), jnp.float32))
        fan_in = pred_len  # only chains if pred_len == in_channels; demo uses 1 layer

    # One-time parameter prep (outside the per-step forward path).
    a_proj, layer_params = prepare_params(pe, weights, biases, B, seq_len, Lt)

    out = model_forward(x, time_stamp, a_proj, layer_params)
    out = jax.block_until_ready(out)

    ref = reference_forward(x, time_stamp, pe, weights, biases)
    assert out.shape == (B, pred_len, enc_in)
    assert out.dtype == jnp.float32
    max_err = float(jnp.max(jnp.abs(out - ref)))
    assert max_err < 1e-3, f"max abs error {max_err}"
    print("KERNEL_OK")
</pallas_src>

<mosaic_0001>
module attributes {stable_mosaic.version = 11 : i64} {
  func.func @kernel(%arg0: memref<1x2xf32, #tpu.memory_space<vmem>>, %arg1: memref<2x16x4xf32, #tpu.memory_space<vmem>>, %arg2: memref<8x360xf32, #tpu.memory_space<vmem>>, %arg3: memref<16x32xf32, #tpu.memory_space<vmem>>, %arg4: memref<16x1xf32, #tpu.memory_space<vmem>>, %arg5: memref<2x8x4xf32, #tpu.memory_space<vmem>>) attributes {dimension_semantics = [], scalar_prefetch = 0 : i64, scratch_operands = 0 : i64, tpu.core_type = #tpu.core_type<tc>} {
    %c0 = arith.constant 0 : index
    %c0_0 = arith.constant 0 : index
    %0 = vector.load %arg0[%c0, %c0_0] : memref<1x2xf32, #tpu.memory_space<vmem>>, vector<1x2xf32>
    %1 = math.floor %0 : vector<1x2xf32>
    %cst = arith.constant 0.000000e+00 : f32
    %cst_1 = arith.constant 3.440000e+02 : f32
    %2 = vector.broadcast %cst : f32 to vector<1x2xf32>
    %3 = arith.maximumf %2, %1 : vector<1x2xf32>
    %4 = vector.broadcast %cst_1 : f32 to vector<1x2xf32>
    %5 = arith.minimumf %4, %3 : vector<1x2xf32>
    %6 = arith.fptosi %5 : vector<1x2xf32> to vector<1x2xi32>
    %7 = tpu.iota {dimensions = array<i32: 0>} : vector<360x2xi32>
    %8 = vector.broadcast %6 : vector<1x2xi32> to vector<360x2xi32>
    %9 = arith.cmpi sge, %7, %8 : vector<360x2xi32>
    %c16_i32 = arith.constant 16 : i32
    %10 = vector.broadcast %c16_i32 : i32 to vector<1x2xi32>
    %11 = arith.addi %6, %10 : vector<1x2xi32>
    %12 = vector.broadcast %11 : vector<1x2xi32> to vector<360x2xi32>
    %13 = arith.cmpi slt, %7, %12 : vector<360x2xi32>
    %14 = arith.andi %9, %13 : vector<360x2xi1>
    %15 = arith.extui %14 : vector<360x2xi1> to vector<360x2xi32>
    %16 = arith.sitofp %15 : vector<360x2xi32> to vector<360x2xf32>
    %c0_2 = arith.constant 0 : index
    %c0_3 = arith.constant 0 : index
    %17 = vector.load %arg2[%c0_2, %c0_3] : memref<8x360xf32, #tpu.memory_space<vmem>>, vector<8x360xf32>
    %cst_4 = arith.constant dense<0.000000e+00> : vector<8x2xf32>
    %18 = tpu.matmul %17, %16, %cst_4 {dimension_numbers = #tpu.dot_dimension_numbers<[1], [0], [0], [1], [0, 0, 1, 1], [], []>} : vector<8x360xf32>, vector<360x2xf32>, vector<8x2xf32> -> vector<8x2xf32>
    %19 = vector.extract_strided_slice %18 {offsets = [0, 0], sizes = [8, 1], strides = [1, 1]} : vector<8x2xf32> to vector<8x1xf32>
    %20 = vector.extract_strided_slice %18 {offsets = [0, 1], sizes = [8, 1], strides = [1, 1]} : vector<8x2xf32> to vector<8x1xf32>
    %21 = tpu.concatenate %19, %20 in 0 : vector<8x1xf32>, vector<8x1xf32> -> vector<16x1xf32>
    %c0_5 = arith.constant 0 : index
    %c0_6 = arith.constant 0 : index
    %c0_7 = arith.constant 0 : index
    %22 = vector.load %arg1[%c0_5, %c0_6, %c0_7] : memref<2x16x4xf32, #tpu.memory_space<vmem>>, vector<2x16x4xf32>
    %23 = vector.shape_cast %22 : vector<2x16x4xf32> to vector<32x4xf32>
    %c0_8 = arith.constant 0 : index
    %c0_9 = arith.constant 0 : index
    %24 = vector.load %arg3[%c0_8, %c0_9] : memref<16x32xf32, #tpu.memory_space<vmem>>, vector<16x32xf32>
    %cst_10 = arith.constant dense<0.000000e+00> : vector<16x4xf32>
    %25 = tpu.matmul %24, %23, %cst_10 {dimension_numbers = #tpu.dot_dimension_numbers<[1], [0], [0], [1], [0, 0, 1, 1], [], []>} : vector<16x32xf32>, vector<32x4xf32>, vector<16x4xf32> -> vector<16x4xf32>
    %26 = vector.broadcast %21 : vector<16x1xf32> to vector<16x4xf32>
    %27 = arith.addf %25, %26 : vector<16x4xf32>
    %c0_11 = arith.constant 0 : index
    %c0_12 = arith.constant 0 : index
    %28 = vector.load %arg4[%c0_11, %c0_12] : memref<16x1xf32, #tpu.memory_space<vmem>>, vector<16x1xf32>
    %29 = vector.broadcast %28 : vector<16x1xf32> to vector<16x4xf32>
    %30 = arith.addf %27, %29 : vector<16x4xf32>
    %31 = vector.shape_cast %30 : vector<16x4xf32> to vector<2x8x4xf32>
    %c0_13 = arith.constant 0 : index
    %c0_14 = arith.constant 0 : index
    %c0_15 = arith.constant 0 : index
    %32 = vector.load %arg5[%c0_13, %c0_14, %c0_15] : memref<2x8x4xf32, #tpu.memory_space<vmem>>, vector<2x8x4xf32>
    tpu.vector_store %arg5[%c0_13, %c0_14, %c0_15], %31 {strides = array<i32>} : memref<2x8x4xf32, #tpu.memory_space<vmem>>, vector<2x8x4xf32>,
    return
  }
}

</mosaic_0001>

<bundles_post_ra>
// kernel: tpu_custom_call.1
= control target key start
LH: loop header
LB: loop body
LE: loop exit
PB: predicated region body
PF: predicated region fallthrough
CT: control target
= control target key end

     0   :  { %v25_v0 = vlaneseq  ;;  %v829_v2 = vmov 0.0|0.0   ;;  %vm830_vm0 = vmmov 0   ;;  %v831_v5 = vmov 0.0   ;;  %s835_s12 = smov 127   ;;  %s1119_s0 = inlined_call_operand.vmem [shape: f32[1,2], index: 0, kind: input, shape index: {}]   ;;  %s1120_s2 = inlined_call_operand.vmem [shape: f32[8,360], index: 2, kind: input, shape index: {}]   ;;  %s1121_s1 = inlined_call_operand.vmem [shape: f32[2,16,4], index: 1, kind: input, shape index: {}]   ;;  %s1122_s3 = inlined_call_operand.vmem [shape: f32[16,32], index: 3, kind: input, shape index: {}]   ;;  %s1123_s4 = inlined_call_operand.vmem [shape: f32[16,1], index: 4, kind: input, shape index: {}]   ;;  %s1124_s5 = inlined_call_operand.vmem [shape: f32[2,8,4], index: 5, kind: output, shape index: {}]  }
   0x1   :  { %v20_v1 = vld [vmem:[%s1119_s0] sm:$0x1]  ;;  %792 = vmatprep.subr.bf16.mxu1 %v829_v2  ;;  %v306_v3 = vld [vmem:[%s1120_s2 + $0x8] sm:$0xff]  ;;  %746 = vmatprep.mubr.msk.f32.mxu1 %vm830_vm0, %v831_v5  ;;  %v832_v21 = vmov 1.0|1.0   ;;  %v457_v63 = vld [vmem:[%s1121_s1 + $0x10] sm:$0xff] }
   0x2   :  { %v21_v4 = vfloor.f32 %v20_v1  ;;  %376 = vmatprep.mubr.f32.mxu0 %v306_v3  ;;  %v874_v7 = vshrl.u32 %v25_v0, 7  ;;  %v305_v60 = vld [vmem:[%s1120_s2] sm:$0xff]  ;;  %v456_v62 = vld [vmem:[%s1121_s1 + $0x8] sm:$0xff]  ;;  %v458_v0 = vld [vmem:[%s1121_s1 + $0x18] sm:$0xff] }
   0x3   :  { %v455_v61 = vld [vmem:[%s1121_s1] sm:$0xff]  ;;  %v814_v3 = vpack.c.bf16 %v458_v0, %v457_v63 }
   0x4   :  { %v22_v6 = vmax.f32 %v21_v4, 0.0  ;;  %v73_v10 = vsub.s32 0, %v874_v7  ;;  %v42_v12 = vadd.s32 128, %v874_v7  ;;  %v43_v13 = vadd.s32 136, %v874_v7  ;;  %v459_v4 = vld [vmem:[%s1122_s3] sm:$0xff] }
   0x5   :  { %v27_v17 = vadd.s32 8, %v874_v7  ;;  %v44_v18 = vadd.s32 144, %v874_v7  ;;  %v45_v19 = vadd.s32 152, %v874_v7  ;;  %v28_v20 = vadd.s32 16, %v874_v7 }
   0x6   :  { %v23_v8 = vmin.f32 %v22_v6, 344.0  ;;  %v29_v22 = vadd.s32 24, %v874_v7  ;;  %v46_v23 = vadd.s32 160, %v874_v7  ;;  %v47_v24 = vadd.s32 168, %v874_v7 }
   0x7   :  { %v30_v25 = vadd.s32 32, %v874_v7  ;;  %v31_v26 = vadd.s32 40, %v874_v7  ;;  %v58_v27 = vadd.s32 256, %v874_v7  ;;  %v59_v28 = vadd.s32 264, %v874_v7 }
   0x8   :  { %v818_v9 = vtrunc.f32 %v23_v8  ;;  %v48_v29 = vadd.s32 176, %v874_v7  ;;  %v49_v30 = vadd.s32 184, %v874_v7  ;;  %v32_v31 = vadd.s32 48, %v874_v7  ;;  %v551_v8 = vld [vmem:[%s1123_s4] sm:$0xff] }
   0x9   :  { %v33_v32 = vadd.s32 56, %v874_v7  ;;  %v60_v33 = vadd.s32 272, %v874_v7  ;;  %v61_v34 = vadd.s32 280, %v874_v7  ;;  %v941_v35 = vadd.s32 336, %v874_v7 }
   0xa   :  { %v819_v11 = vcvt.f32.s32 %v818_v9  ;;  %v946_v36 = vadd.s32 344, %v874_v7  ;;  %v949_v37 = vadd.s32 352, %v874_v7  ;;  %v50_v38 = vadd.s32 192, %v874_v7 }
   0xb   :  { %v51_v39 = vadd.s32 200, %v874_v7  ;;  %v34_v40 = vadd.s32 64, %v874_v7  ;;  %v35_v41 = vadd.s32 72, %v874_v7  ;;  %v62_v42 = vadd.s32 288, %v874_v7 }
   0xc   :  { %v879_v14 = vrot.slane %v819_v11, %v73_v10  ;;  %v120_v15 = vadd.s32 16, %v819_v11  ;;  %v63_v43 = vadd.s32 296, %v874_v7  ;;  %v52_v44 = vadd.s32 208, %v874_v7 }
   0xd   :  { %v53_v45 = vadd.s32 216, %v874_v7  ;;  %v36_v46 = vadd.s32 80, %v874_v7  ;;  %v37_v47 = vadd.s32 88, %v874_v7  ;;  %v64_v48 = vadd.s32 304, %v874_v7 }
   0xe   :  { %vm91_vm1 = vcmp.ge.s32.totalorder %v42_v12, %v879_v14  ;;  %v882_v16 = vrot.slane %v120_v15, %v73_v10  ;;  %vm92_vm2 = vcmp.ge.s32.totalorder %v43_v13, %v879_v14  ;;  %vm75_vm6 = vcmp.ge.s32.totalorder %v874_v7, %v879_v14 }
   0xf   :  { %vm76_vm9 = vcmp.ge.s32.totalorder %v27_v17, %v879_v14  ;;  %vm93_vm13 = vcmp.ge.s32.totalorder %v44_v18, %v879_v14  ;;  %vm94_vm0 = vcmp.ge.s32.totalorder %v45_v19, %v879_v14  ;;  %v65_v49 = vadd.s32 312, %v874_v7 }
  0x10   :  { %vm141_vm3 = vcmp.lt.s32.totalorder %v42_v12, %v882_v16  ;;  %vm142_vm4 = vcmp.lt.s32.totalorder %v43_v13, %v882_v16  ;;  %vm125_vm7 = vcmp.lt.s32.totalorder %v874_v7, %v882_v16  ;;  %vm126_vm10 = vcmp.lt.s32.totalorder %v27_v17, %v882_v16 }
  0x11   :  { %vm186_vm5 = vmand %vm91_vm1, %vm141_vm3  ;;  %vm143_vm14 = vcmp.lt.s32.totalorder %v44_v18, %v882_v16  ;;  %vm144_vm1 = vcmp.lt.s32.totalorder %v45_v19, %v882_v16  ;;  %v54_v50 = vadd.s32 224, %v874_v7  ;;  %v55_v51 = vadd.s32 232, %v874_v7  ;;  %v552_v18 = vld [vmem:[%s1123_s4 + $0x8] sm:$0xff] }
  0x12   :  { %vm187_vm8 = vmand %vm92_vm2, %vm142_vm4  ;;  %vm77_vm4 = vcmp.ge.s32.totalorder %v28_v20, %v879_v14  ;;  %v38_v52 = vadd.s32 96, %v874_v7  ;;  %v39_v53 = vadd.s32 104, %v874_v7  ;;  %v66_v54 = vadd.s32 320, %v874_v7 }
  0x13   :  { %vm760_vm11 = vmpackc.low %vm187_vm8, %vm186_vm5  ;;  %vm127_vm5 = vcmp.lt.s32.totalorder %v28_v20, %v882_v16  ;;  %vm128_vm8 = vcmp.lt.s32.totalorder %v29_v22, %v882_v16  ;;  %v67_v55 = vadd.s32 328, %v874_v7  ;;  %v56_v56 = vadd.s32 240, %v874_v7 }
  0x14   :  { %761 = vmatprep.subr.msk.bf16.mxu0 %vm760_vm11, %v832_v21  ;;  %vm170_vm12 = vmand %vm75_vm6, %vm125_vm7  ;;  %vm78_vm7 = vcmp.ge.s32.totalorder %v29_v22, %v879_v14  ;;  %vm95_vm11 = vcmp.ge.s32.totalorder %v46_v23, %v879_v14  ;;  %v57_v57 = vadd.s32 248, %v874_v7  ;;  %v40_v58 = vadd.s32 112, %v874_v7 }
  0x15   :  { %vm171_vm15 = vmand %vm76_vm9, %vm126_vm10  ;;  %v41_v59 = vadd.s32 120, %v874_v7  ;;  %v810_v1 = vpack.c.bf16 %v456_v62, %v455_v61  ;;  %v833_v6 = vmov 1.0   ;;  %v834_v7 = vmov 0  }
  0x16   :  { %vm762_vm2 = vmpackc.low %vm171_vm15, %vm170_vm12  ;;  %vm145_vm12 = vcmp.lt.s32.totalorder %v46_v23, %v882_v16  ;;  %vm146_vm15 = vcmp.lt.s32.totalorder %v47_v24, %v882_v16  ;;  %827 = vset.pattern.permute.xlu0 %v834_v7  ;;  %828 = vset.pattern.permute.xlu1 %v834_v7 }
  0x17   :  { %763 = vmatpush3.bf16.msk.msra.mxu0 %vm762_vm2, %v832_v21  ;;  %vm188_vm3 = vmand %vm93_vm13, %vm143_vm14  ;;  %vm96_vm14 = vcmp.ge.s32.totalorder %v47_v24, %v879_v14  ;;  %vm79_vm2 = vcmp.ge.s32.totalorder %v30_v25, %v879_v14  ;;  %555 = vperm.xlu1 %828, %v551_v8  }
  0x18   :  { %vm189_vm6 = vmand %vm94_vm0, %vm144_vm1 }
  0x19   :  { %vm764_vm9 = vmpackc.low %vm189_vm6, %vm188_vm3  ;;  %vm129_vm3 = vcmp.lt.s32.totalorder %v30_v25, %v882_v16  ;;  %vm130_vm6 = vcmp.lt.s32.totalorder %v31_v26, %v882_v16 }
  0x1a   :  { %765 = vmatprep.subr.msk.bf16.mxu0 %vm764_vm9, %v832_v21  ;;  %vm172_vm10 = vmand %vm77_vm4, %vm127_vm5  ;;  %vm80_vm5 = vcmp.ge.s32.totalorder %v31_v26, %v879_v14  ;;  %vm107_vm9 = vcmp.ge.s32.totalorder %v58_v27, %v879_v14 }
  0x1b   :  { %vm173_vm13 = vmand %vm78_vm7, %vm128_vm8 }
  0x1c   :  { %vm766_vm0 = vmpackc.low %vm173_vm13, %vm172_vm10  ;;  %vm157_vm10 = vcmp.lt.s32.totalorder %v58_v27, %v882_v16  ;;  %vm158_vm13 = vcmp.lt.s32.totalorder %v59_v28, %v882_v16 }
  0x1d   :  { %767 = vmatpush3.bf16.msk.msra.mxu0 %vm766_vm0, %v832_v21  ;;  %vm190_vm1 = vmand %vm95_vm11, %vm145_vm12  ;;  %vm108_vm12 = vcmp.ge.s32.totalorder %v59_v28, %v879_v14  ;;  %vm97_vm0 = vcmp.ge.s32.totalorder %v48_v29, %v879_v14 }
  0x1e   :  { %vm191_vm4 = vmand %vm96_vm14, %vm146_vm15 }
  0x1f   :  { %vm768_vm7 = vmpackc.low %vm191_vm4, %vm190_vm1  ;;  %vm147_vm1 = vcmp.lt.s32.totalorder %v48_v29, %v882_v16  ;;  %vm148_vm4 = vcmp.lt.s32.totalorder %v49_v30, %v882_v16 }
  0x20   :  { %769 = vmatprep.subr.msk.bf16.mxu0 %vm768_vm7, %v832_v21  ;;  %vm174_vm8 = vmand %vm79_vm2, %vm129_vm3  ;;  %vm98_vm3 = vcmp.ge.s32.totalorder %v49_v30, %v879_v14  ;;  %vm82_vm7 = vcmp.ge.s32.totalorder %v33_v32, %v879_v14 }
  0x21   :  { %vm175_vm11 = vmand %vm80_vm5, %vm130_vm6  ;;  %vm81_vm6 = vcmp.ge.s32.totalorder %v32_v31, %v879_v14 }
  0x22   :  { %vm770_vm14 = vmpackc.low %vm175_vm11, %vm174_vm8  ;;  %vm140_vm11 = vcmp.lt.s32.totalorder %v41_v59, %v882_v16 }
  0x23   :  { %771 = vmatpush3.bf16.msk.msra.mxu0 %vm770_vm14, %v832_v21  ;;  %vm202_vm15 = vmand %vm107_vm9, %vm157_vm10  ;;  %vm131_vm9 = vcmp.lt.s32.totalorder %v32_v31, %v882_v16  ;;  %vm132_vm10 = vcmp.lt.s32.totalorder %v33_v32, %v882_v16 }
  0x24   :  { %vm203_vm2 = vmand %vm108_vm12, %vm158_vm13 }
  0x25   :  { %vm793_vm5 = vmpackc.low %vm203_vm2, %vm202_vm15  ;;  %vm100_vm15 = vcmp.ge.s32.totalorder %v51_v39, %v879_v14 }
  0x26   :  { %794 = vmatpush3.bf16.msk.msra.mxu1 %vm793_vm5, %v832_v21  ;;  %vm192_vm8 = vmand %vm97_vm0, %vm147_vm1  ;;  %vm159_vm5 = vcmp.lt.s32.totalorder %v60_v33, %v882_v16 }
  0x27   :  { %vm193_vm13 = vmand %vm98_vm3, %vm148_vm4  ;;  %795 = vmatprep.subr.bf16.mxu1 %v829_v2  ;;  %vm109_vm4 = vcmp.ge.s32.totalorder %v60_v33, %v879_v14 }
  0x28   :  { %vm772_vm2 = vmpackc.low %vm193_vm13, %vm192_vm8  ;;  %vm110_vm8 = vcmp.ge.s32.totalorder %v61_v34, %v879_v14  ;;  %vm160_vm13 = vcmp.lt.s32.totalorder %v61_v34, %v882_v16 }
  0x29   :  { %773 = vmatprep.subr.msk.bf16.mxu0 %vm772_vm2, %v832_v21  ;;  %vm176_vm3 = vmand %vm81_vm6, %vm131_vm9  ;;  %vm99_vm9 = vcmp.ge.s32.totalorder %v50_v38, %v879_v14  ;;  %vm149_vm2 = vcmp.lt.s32.totalorder %v50_v38, %v882_v16 }
  0x2a   :  { %vm177_vm0 = vmand %vm82_vm7, %vm132_vm10  ;;  %vm150_vm7 = vcmp.lt.s32.totalorder %v51_v39, %v882_v16 }
  0x2b   :  { %vm774_vm1 = vmpackc.low %vm177_vm0, %vm176_vm3  ;;  %vm133_vm3 = vcmp.lt.s32.totalorder %v34_v40, %v882_v16 }
  0x2c   :  { %775 = vmatpush3.bf16.msk.msra.mxu0 %vm774_vm1, %v832_v21  ;;  %vm204_vm6 = vmand %vm109_vm4, %vm159_vm5  ;;  %vm83_vm1 = vcmp.ge.s32.totalorder %v34_v40, %v879_v14  ;;  %vm84_vm5 = vcmp.ge.s32.totalorder %v35_v41, %v879_v14 }
  0x2d   :  { %vm205_vm14 = vmand %vm110_vm8, %vm160_vm13  ;;  %vm134_vm8 = vcmp.lt.s32.totalorder %v35_v41, %v882_v16 }
  0x2e   :  { %vm796_vm10 = vmpackc.low %vm205_vm14, %vm204_vm6  ;;  %vm111_vm6 = vcmp.ge.s32.totalorder %v62_v42, %v879_v14 }
  0x2f   :  { %797 = vmatpush3.bf16.msk.msra.mxu1 %vm796_vm10, %v832_v21  ;;  %vm194_vm0 = vmand %vm99_vm9, %vm149_vm2  ;;  %vm161_vm9 = vcmp.lt.s32.totalorder %v62_v42, %v882_v16 }
  0x30   :  { %vm195_vm4 = vmand %vm100_vm15, %vm150_vm7  ;;  %798 = vmatprep.subr.bf16.mxu1 %v829_v2  ;;  %vm112_vm15 = vcmp.ge.s32.totalorder %v63_v43, %v879_v14  ;;  %vm162_vm7 = vcmp.lt.s32.totalorder %v63_v43, %v882_v16 }
  0x31   :  { %vm776_vm13 = vmpackc.low %vm195_vm4, %vm194_vm0  ;;  %vm101_vm4 = vcmp.ge.s32.totalorder %v52_v44, %v879_v14 }
  0x32   :  { %777 = vmatprep.subr.msk.bf16.mxu0 %vm776_vm13, %v832_v21  ;;  %vm178_vm14 = vmand %vm83_vm1, %vm133_vm3  ;;  %vm151_vm1 = vcmp.lt.s32.totalorder %v52_v44, %v882_v16  ;;  %vm102_vm13 = vcmp.ge.s32.totalorder %v53_v45, %v879_v14 }
  0x33   :  { %vm179_vm2 = vmand %vm84_vm5, %vm134_vm8  ;;  %vm152_vm5 = vcmp.lt.s32.totalorder %v53_v45, %v882_v16 }
  0x34   :  { %vm778_vm10 = vmpackc.low %vm179_vm2, %vm178_vm14  ;;  %vm85_vm2 = vcmp.ge.s32.totalorder %v36_v46, %v879_v14 }
  0x35   :  { %779 = vmatpush3.bf16.msk.msra.mxu0 %vm778_vm10, %v832_v21  ;;  %vm206_vm0 = vmand %vm111_vm6, %vm161_vm9  ;;  %vm135_vm6 = vcmp.lt.s32.totalorder %v36_v46, %v882_v16 }
  0x36   :  { %vm207_vm3 = vmand %vm112_vm15, %vm162_vm7  ;;  %vm86_vm15 = vcmp.ge.s32.totalorder %v37_v47, %v879_v14  ;;  %vm136_vm7 = vcmp.lt.s32.totalorder %v37_v47, %v882_v16 }
  0x37   :  { %vm799_vm8 = vmpackc.low %vm207_vm3, %vm206_vm0 }
  0x38   :  { %800 = vmatpush3.bf16.msk.msra.mxu1 %vm799_vm8, %v832_v21  ;;  %vm196_vm14 = vmand %vm101_vm4, %vm151_vm1  ;;  %vm113_vm4 = vcmp.ge.s32.totalorder %v64_v48, %v879_v14  ;;  %vm163_vm1 = vcmp.lt.s32.totalorder %v64_v48, %v882_v16 }
  0x39   :  { %vm197_vm9 = vmand %vm102_vm13, %vm152_vm5  ;;  %801 = vmatprep.subr.bf16.mxu1 %v829_v2  ;;  %vm114_vm13 = vcmp.ge.s32.totalorder %v65_v49, %v879_v14  ;;  %vm164_vm5 = vcmp.lt.s32.totalorder %v65_v49, %v882_v16 }
  0x3a   :  { %vm780_vm10 = vmpackc.low %vm197_vm9, %vm196_vm14  ;;  %vm103_vm9 = vcmp.ge.s32.totalorder %v54_v50, %v879_v14 }
  0x3b   :  { %781 = vmatprep.subr.msk.bf16.mxu0 %vm780_vm10, %v832_v21  ;;  %vm180_vm0 = vmand %vm85_vm2, %vm135_vm6  ;;  %vm153_vm2 = vcmp.lt.s32.totalorder %v54_v50, %v882_v16  ;;  %vm104_vm10 = vcmp.ge.s32.totalorder %v55_v51, %v879_v14 }
  0x3c   :  { %vm181_vm3 = vmand %vm86_vm15, %vm136_vm7  ;;  %vm154_vm15 = vcmp.lt.s32.totalorder %v55_v51, %v882_v16 }
  0x3d   :  { %vm782_vm8 = vmpackc.low %vm181_vm3, %vm180_vm0  ;;  %vm87_vm3 = vcmp.ge.s32.totalorder %v38_v52, %v879_v14 }
  0x3e   :  { %783 = vmatpush3.bf16.msk.msra.mxu0 %vm782_vm8, %v832_v21  ;;  %vm208_vm14 = vmand %vm113_vm4, %vm163_vm1  ;;  %vm137_vm4 = vcmp.lt.s32.totalorder %v38_v52, %v882_v16 }
  0x3f   :  { %vm209_vm6 = vmand %vm114_vm13, %vm164_vm5  ;;  %vm88_vm13 = vcmp.ge.s32.totalorder %v39_v53, %v879_v14  ;;  %vm138_vm5 = vcmp.lt.s32.totalorder %v39_v53, %v882_v16 }
  0x40   :  { %vm802_vm7 = vmpackc.low %vm209_vm6, %vm208_vm14 }
  0x41   :  { %803 = vmatpush3.bf16.msk.msra.mxu1 %vm802_vm7, %v832_v21  ;;  %vm198_vm0 = vmand %vm103_vm9, %vm153_vm2  ;;  %vm115_vm9 = vcmp.ge.s32.totalorder %v66_v54, %v879_v14  ;;  %vm165_vm2 = vcmp.lt.s32.totalorder %v66_v54, %v882_v16 }
  0x42   :  { %vm199_vm1 = vmand %vm104_vm10, %vm154_vm15  ;;  %804 = vmatprep.subr.bf16.mxu1 %v829_v2  ;;  %vm116_vm10 = vcmp.ge.s32.totalorder %v67_v55, %v879_v14  ;;  %vm166_vm15 = vcmp.lt.s32.totalorder %v67_v55, %v882_v16 }
  0x43   :  { %vm784_vm8 = vmpackc.low %vm199_vm1, %vm198_vm0  ;;  %vm105_vm1 = vcmp.ge.s32.totalorder %v56_v56, %v879_v14 }
  0x44   :  { %785 = vmatprep.subr.msk.bf16.mxu0 %vm784_vm8, %v832_v21  ;;  %vm182_vm14 = vmand %vm87_vm3, %vm137_vm4  ;;  %vm155_vm3 = vcmp.lt.s32.totalorder %v56_v56, %v882_v16  ;;  %vm106_vm8 = vcmp.ge.s32.totalorder %v57_v57, %v879_v14 }
  0x45   :  { %vm183_vm6 = vmand %vm88_vm13, %vm138_vm5  ;;  %vm156_vm13 = vcmp.lt.s32.totalorder %v57_v57, %v882_v16 }
  0x46   :  { %vm786_vm7 = vmpackc.low %vm183_vm6, %vm182_vm14  ;;  %vm89_vm6 = vcmp.ge.s32.totalorder %v40_v58, %v879_v14 }
  0x47   :  { %787 = vmatpush3.bf16.msk.msra.mxu0 %vm786_vm7, %v832_v21  ;;  %vm210_vm0 = vmand %vm115_vm9, %vm165_vm2  ;;  %vm139_vm7 = vcmp.lt.s32.totalorder %v40_v58, %v882_v16  ;;  %vm90_vm2 = vcmp.ge.s32.totalorder %v41_v59, %v879_v14 }
  0x48   :  { %vm211_vm4 = vmand %vm116_vm10, %vm166_vm15 }
  0x49   :  { %vm805_vm5 = vmpackc.low %vm211_vm4, %vm210_vm0 }
  0x4a   :  { %806 = vmatpush3.bf16.msk.msra.mxu1 %vm805_vm5, %v832_v21  ;;  %vm200_vm14 = vmand %vm105_vm1, %vm155_vm3  ;;  %vm1125_vm1 = vcmp.lt.s32.totalorder %v941_v35, %v882_v16  ;;  %vm1126_vm3 = vcmp.ge.s32.totalorder %v941_v35, %v879_v14  ;;  %vm1129_vm5 = vcmp.lt.s32.totalorder %v949_v37, %v882_v16 }
  0x4b   :  { %vm201_vm9 = vmand %vm106_vm8, %vm156_vm13  ;;  %807 = vmatprep.subr.bf16.mxu1 %v829_v2  ;;  %vm1127_vm8 = vcmp.lt.s32.totalorder %v946_v36, %v882_v16  ;;  %v307_v2 = vld [vmem:[%s1120_s2 + $0x10] sm:$0xff] }
  0x4c   :  { %vm788_vm10 = vmpackc.low %vm201_vm9, %vm200_vm14  ;;  %vm1130_vm14 = vcmp.ge.s32.totalorder %v949_v37, %v879_v14  ;;  %vm469_vm9 = vcmask 261120  }
  0x4d   :  { %789 = vmatprep.subr.msk.bf16.mxu0 %vm788_vm10, %v832_v21  ;;  %vm184_vm15 = vmand %vm89_vm6, %vm139_vm7  ;;  %vm308_vm7 = vcmask 850944  }
  0x4e   :  { %vm185_vm12 = vmand %vm90_vm2, %vm140_vm11  ;;  %vm1128_vm11 = vcmp.ge.s32.totalorder %v946_v36, %v879_v14  ;;  %vm565_vm2 = vcmask 31744  }
  0x4f   :  { %vm790_vm0 = vmpackc.low %vm185_vm12, %vm184_vm15 }
  0x50   :  { %791 = vmatpush3.bf16.msk.msra.mxu0 %vm790_vm0, %v832_v21  ;;  %vm212_vm4 = vmand %vm1126_vm3, %vm1125_vm1 }
  0x51   :  { %vm213_vm12 = vmand %vm1128_vm11, %vm1127_vm8 }
  0x52   :  { %vm808_vm13 = vmpackc.low %vm213_vm12, %vm212_vm4 }
  0x53   :  { %809 = vmatpush3.bf16.msk.msra.mxu1 %vm808_vm13, %v832_v21  ;;  %377 = vmatmul.mubr.f32.vlgmr.msra.gmra.mrb[0].mxu0 %v305_v60  ;;  %vm214_vm6 = vmand %vm1130_vm14, %vm1129_vm5 }
  0x54   :  { %744 = vmatprep.subr.mxu1 %v831_v5  ;;  %v460_v5 = vld [vmem:[%s1122_s3 + $0x8] sm:$0xff] }
  0x57   :  { %745 = vmatpush3.msk.msra.mxu1 %vm214_vm6, %v833_v6 }
  0x58   :  { %747 = vmatmul.mubr.msk.f32.vlgmr.msra.gmra.mrb[0].mxu1 %vm308_vm7, %v307_v2  ;;  %811 = vmatprep.subr.bf16.mxu1 %v810_v1 }
  0x59   :  { %813 = vmatpush3.bf16.msra.mxu1 %v810_v1  ;;  %757 = vmatprep.mubr.msk.f32.mxu1 %vm469_vm9, %v459_v4 }
  0x5a   :  { %815 = vmatprep.subr.bf16.mxu1 %v814_v3 }
  0x5d   :  { %817 = vmatpush3.bf16.msra.mxu1 %v814_v3 }
  0x60   :  { %758 = vmatmul.mubr.msk.f32.vlgmr.msra.gmra.mrb[2].mxu1 %vm469_vm9, %v460_v5 }
  0x96   :  { %v556_v20 = vpop.permute.xlu1 %555 }
 0x126   :  { %v697_v9 = vpop.f32.mrb[0].mxu0 }
 0x127   :  { %v698_v10 = vpop.f32.mrb[1].mxu0 }
 0x128   :  { %v699_v11 = vadd.f32 %v698_v10, %v697_v9 }
 0x12b   :  { %v448_v12 = vpop.f32.mrb[0].mxu1 }
 0x12c   :  { %v449_v13 = vadd.f32 %v699_v11, %v448_v12  ;;  %v748_v14 = vpop.f32.mrb[1].mxu1 }
 0x12e   :  { %453 = vrot.lane.b32.xlu0 %v449_v13, %s835_s12 }
 0x132   :  { %462 = vperm.xlu0 %827, %v449_v13  }
 0x133   :  { %v759_v15 = vpop.f32.mrb[2].mxu1 }
 0x134   :  { %v542_v16 = vpop.f32.mrb[3].mxu1 }
 0x1a0   :  { %v454_v17 = vpop.permute.xlu0 %453 }
 0x1a1   :  { %466 = vperm.xlu1 %828, %v454_v17  }
 0x1a5   :  { %560 = vperm.xlu1 %828, %v552_v18  }
 0x1b1   :  { %v463_v19 = vpop.permute.xlu0 %462 }
 0x1b2   :  { %v543_v21 = vadd.f32 %v542_v16, %v463_v19 }
 0x1b4   :  { %v563_v22 = vadd.f32 %v556_v20, %v543_v21 }
 0x1b6   :  { %566 = vst.msk [vmem:[%s1124_s5] sm:$0xff] %vm565_vm2, %v563_v22 }
 0x220   :  { %v467_v23 = vpop.permute.xlu1 %466 }
 0x221   :  { %v548_v24 = vadd.f32 %v759_v15, %v467_v23 }
 0x224   :  { %v561_v25 = vpop.permute.xlu1 %560 }
 0x225   :  { %v564_v26 = vadd.f32 %v561_v25, %v548_v24 }
 0x227   :  { %567 = vst.msk [vmem:[%s1124_s5 + $0x8] sm:$0xff] %vm565_vm2, %v564_v26 }

</bundles_post_ra>
